<compile_context>
chip_gen: v7x
topology: tpu7x:2x2x1
jax: 0.10.0
libtpu: 0.0.40
codegen_flags: <defaults>
</compile_context>

<pallas_src>
import math

import jax
import jax.numpy as jnp
from jax import lax
from jax.experimental import pallas as pl
from jax.experimental.pallas import tpu as pltpu

FREQ_EMB = 256          # frequency_embedding_size (even)
HIDDEN = 32             # hidden_size
MAX_PERIOD = 10000.0
DEFAULT_TN = 1024       # rows of t per grid step (multiple of 8)
INNER_CHUNK = 128       # rows per in-kernel chunk (bounds vreg live ranges)


def timestep_embedder_kernel(freqs_ref, t_ref, w1_ref, b1_ref, w2_ref, b2_ref,
                             o_ref):
    """One N-tile of the forward pass.

    freqs_ref : (1, half)  f32    precomputed sinusoidal frequencies
    t_ref     : (TN, 1)    f32
    w1_ref    : (F, H)     bf16
    b1_ref    : (1, H)     f32
    w2_ref    : (H, H)     bf16
    b2_ref    : (1, H)     f32
    o_ref     : (TN, H)    f32
    """
    tn = t_ref.shape[0]
    h = o_ref.shape[1]
    chunk = min(INNER_CHUNK, tn)        # wrapper guarantees tn % chunk == 0
    n_chunks = tn // chunk

    # Resident values / hoisted broadcasts (JAX does not CSE broadcast_in_dim,
    # so do these once, outside the chunk loop).
    freqs = freqs_ref[...]                                  # (1, half) f32
    w1 = w1_ref[...]                                        # (F, H)  bf16
    w2 = w2_ref[...]                                        # (H, H)  bf16
    b1 = jnp.broadcast_to(b1_ref[...], (chunk, h))          # (chunk, H) f32
    b2 = jnp.broadcast_to(b2_ref[...], (chunk, h))          # (chunk, H) f32

    def compute(r):
        t_c = t_ref[pl.ds(r, chunk), :]                     # (chunk, 1) f32
        args = t_c * freqs                                  # (chunk, half) f32
        # concat([cos, sin], -1) lands on a 128-lane boundary -> pure layout
        # relabel, and gives a single K=256 dot that fills the MXU.
        emb = jnp.concatenate([jnp.cos(args), jnp.sin(args)],
                              axis=-1).astype(jnp.bfloat16)  # (chunk, F) bf16

        hm = jnp.dot(emb, w1, preferred_element_type=jnp.float32) + b1
        hm = hm * jax.nn.sigmoid(hm)                        # SiLU, f32

        out = jnp.dot(hm.astype(jnp.bfloat16), w2,
                      preferred_element_type=jnp.float32) + b2
        o_ref[pl.ds(r, chunk), :] = out

    if n_chunks == 1:
        compute(0)
    else:
        def body(c, carry):
            compute(pl.multiple_of(c * chunk, chunk))
            return carry
        lax.fori_loop(0, n_chunks, body, 0)
    # TODO(synk): odd frequency_embedding_size would need a zero-pad column;
    # unreachable for F=256.


def timestep_embedder(t, w1, b1, w2, b2, *, tn=DEFAULT_TN):
    """t: [N] float -> [N, HIDDEN] float32."""
    n = t.shape[0]
    f, h = w1.shape
    half = f // 2

    # Precomputed frequency table (hoisted out of the kernel / EUP path).
    freqs = jnp.exp(-(math.log(MAX_PERIOD) / half)
                    * jnp.arange(half, dtype=jnp.float32)).reshape(1, half)

    # --- choose the N tile ------------------------------------------------
    n_pad8 = ((n + 7) // 8) * 8
    # v7x: guarantee >= 2 grid steps whenever possible so the "parallel" axis
    # shards across both TensorCores (harmless on single-TC v5e/v6e).
    if n_pad8 >= 16:
        tn = min(tn, ((n_pad8 // 2 + 7) // 8) * 8)
    tn = min(tn, n_pad8)
    # Keep tn a multiple of the inner chunk when it exceeds it so the
    # in-kernel chunk loop divides evenly.
    if tn > INNER_CHUNK:
        tn = (tn // INNER_CHUNK) * INNER_CHUNK
    n_pad = ((n_pad8 + tn - 1) // tn) * tn
    grid = (n_pad // tn,)

    # --- operands ----------------------------------------------------------
    t2d = t.astype(jnp.float32).reshape(n, 1)
    if n_pad != n:
        t2d = jnp.pad(t2d, ((0, n_pad - n), (0, 0)))

    # bf16 MXU operands (accumulation stays f32); args/biases remain f32.
    w1_bf = w1.astype(jnp.bfloat16)
    w2_bf = w2.astype(jnp.bfloat16)
    b1_2d = b1.reshape(1, h).astype(jnp.float32)
    b2_2d = b2.reshape(1, h).astype(jnp.float32)

    cost = pl.CostEstimate(
        flops=2 * n_pad * (f * h + h * h),
        transcendentals=n_pad * (2 * half + h),
        bytes_accessed=(4 * half + 2 * f * h + 2 * h * h + 4 * 2 * h
                        + 4 * n_pad * (1 + h)),
    )

    out = pl.pallas_call(
        timestep_embedder_kernel,
        out_shape=jax.ShapeDtypeStruct((n_pad, h), jnp.float32),
        grid=grid,
        in_specs=[
            pl.BlockSpec((1, half), lambda i: (0, 0)),   # freqs (resident)
            pl.BlockSpec((tn, 1), lambda i: (i, 0)),     # t (tiled over N)
            pl.BlockSpec((f, h), lambda i: (0, 0)),      # W1 (resident, bf16)
            pl.BlockSpec((1, h), lambda i: (0, 0)),      # b1 (resident)
            pl.BlockSpec((h, h), lambda i: (0, 0)),      # W2 (resident, bf16)
            pl.BlockSpec((1, h), lambda i: (0, 0)),      # b2 (resident)
        ],
        out_specs=pl.BlockSpec((tn, h), lambda i: (i, 0)),
        compiler_params=pltpu.CompilerParams(
            dimension_semantics=("parallel",)),
        cost_estimate=cost,
    )(freqs, t2d, w1_bf, b1_2d, w2_bf, b2_2d)

    return out[:n] if n_pad != n else out


def _reference(t, w1, b1, w2, b2):
    """Pure-JAX f32 reference mirroring the PyTorch module."""
    half = FREQ_EMB // 2
    freqs = jnp.exp(-math.log(MAX_PERIOD)
                    * jnp.arange(half, dtype=jnp.float32) / half)
    args = t[:, None].astype(jnp.float32) * freqs[None]
    emb = jnp.concatenate([jnp.cos(args), jnp.sin(args)], axis=-1)
    h = emb @ w1 + b1.reshape(1, -1)
    h = h * jax.nn.sigmoid(h)
    return h @ w2 + b2.reshape(1, -1)


if __name__ == "__main__":
    key = jax.random.PRNGKey(0)
    k_t, k_w1, k_b1, k_w2, k_b2 = jax.random.split(key, 5)

    N = 8
    # timesteps (e.g. diffusion steps)
    t = jax.random.uniform(k_t, (N,), jnp.float32, minval=0.0, maxval=1000.0)

    # Deterministic parameter init (PyTorch nn.Linear-style uniform bounds),
    # stored as (in_features, out_features); biases stored as (1, H).
    bound1 = 1.0 / math.sqrt(FREQ_EMB)
    w1 = jax.random.uniform(k_w1, (FREQ_EMB, HIDDEN), jnp.float32,
                            minval=-bound1, maxval=bound1)
    b1 = jax.random.uniform(k_b1, (1, HIDDEN), jnp.float32,
                            minval=-bound1, maxval=bound1)
    bound2 = 1.0 / math.sqrt(HIDDEN)
    w2 = jax.random.uniform(k_w2, (HIDDEN, HIDDEN), jnp.float32,
                            minval=-bound2, maxval=bound2)
    b2 = jax.random.uniform(k_b2, (1, HIDDEN), jnp.float32,
                            minval=-bound2, maxval=bound2)

    out = timestep_embedder(t, w1, b1, w2, b2)
    out = jax.block_until_ready(out)

    ref = _reference(t, w1, b1, w2, b2)
    assert out.shape == (N, HIDDEN)
    # Tolerance relaxed vs. the pure-f32 version: MXU operands are bf16
    # (f32 accumulation), so expect ~0.5% relative error.
    assert jnp.allclose(out, ref, atol=2e-2, rtol=2e-2), "mismatch vs reference"

    print("KERNEL_OK")
</pallas_src>

<mosaic_0001>
module attributes {stable_mosaic.version = 11 : i64} {
  func.func @timestep_embedder_kernel(%arg0: i32, %arg1: memref<1x128xf32, #tpu.memory_space<vmem>>, %arg2: memref<8x1xf32, #tpu.memory_space<vmem>>, %arg3: memref<256x32xbf16, #tpu.memory_space<vmem>>, %arg4: memref<1x32xf32, #tpu.memory_space<vmem>>, %arg5: memref<32x32xbf16, #tpu.memory_space<vmem>>, %arg6: memref<1x32xf32, #tpu.memory_space<vmem>>, %arg7: memref<8x32xf32, #tpu.memory_space<vmem>>) attributes {dimension_semantics = [#tpu.dimension_semantics<parallel>], iteration_bounds = array<i64: 1>, scalar_prefetch = 0 : i64, scratch_operands = 0 : i64, tpu.core_type = #tpu.core_type<tc>, window_params = [{pipeline_mode = #tpu.pipeline_mode<synchronous>, transform_indices = @transform_0, window_bounds = array<i64: 1, 128>}, {transform_indices = @transform_1, window_bounds = array<i64: 8, 1>}, {pipeline_mode = #tpu.pipeline_mode<synchronous>, transform_indices = @transform_2, window_bounds = array<i64: 256, 32>}, {pipeline_mode = #tpu.pipeline_mode<synchronous>, transform_indices = @transform_3, window_bounds = array<i64: 1, 32>}, {pipeline_mode = #tpu.pipeline_mode<synchronous>, transform_indices = @transform_4, window_bounds = array<i64: 32, 32>}, {pipeline_mode = #tpu.pipeline_mode<synchronous>, transform_indices = @transform_5, window_bounds = array<i64: 1, 32>}, {transform_indices = @transform_6, window_bounds = array<i64: 8, 32>}]} {
    %c0 = arith.constant 0 : index
    %c0_0 = arith.constant 0 : index
    %0 = vector.load %arg1[%c0, %c0_0] : memref<1x128xf32, #tpu.memory_space<vmem>>, vector<1x128xf32>
    %c0_1 = arith.constant 0 : index
    %c0_2 = arith.constant 0 : index
    %1 = vector.load %arg3[%c0_1, %c0_2] : memref<256x32xbf16, #tpu.memory_space<vmem>>, vector<256x32xbf16>
    %c0_3 = arith.constant 0 : index
    %c0_4 = arith.constant 0 : index
    %2 = vector.load %arg5[%c0_3, %c0_4] : memref<32x32xbf16, #tpu.memory_space<vmem>>, vector<32x32xbf16>
    %c0_5 = arith.constant 0 : index
    %c0_6 = arith.constant 0 : index
    %3 = vector.load %arg4[%c0_5, %c0_6] : memref<1x32xf32, #tpu.memory_space<vmem>>, vector<1x32xf32>
    %4 = vector.shape_cast %3 : vector<1x32xf32> to vector<1x32xf32>
    %5 = vector.broadcast %4 : vector<1x32xf32> to vector<8x32xf32>
    %c0_7 = arith.constant 0 : index
    %c0_8 = arith.constant 0 : index
    %6 = vector.load %arg6[%c0_7, %c0_8] : memref<1x32xf32, #tpu.memory_space<vmem>>, vector<1x32xf32>
    %7 = vector.shape_cast %6 : vector<1x32xf32> to vector<1x32xf32>
    %8 = vector.broadcast %7 : vector<1x32xf32> to vector<8x32xf32>
    %c0_9 = arith.constant 0 : index
    %c0_10 = arith.constant 0 : index
    %9 = vector.load %arg2[%c0_9, %c0_10] : memref<8x1xf32, #tpu.memory_space<vmem>>, vector<8x1xf32>
    %10 = vector.broadcast %9 : vector<8x1xf32> to vector<8x128xf32>
    %11 = vector.broadcast %0 : vector<1x128xf32> to vector<8x128xf32>
    %12 = arith.mulf %10, %11 : vector<8x128xf32>
    %13 = math.cos %12 : vector<8x128xf32>
    %14 = math.sin %12 : vector<8x128xf32>
    %15 = tpu.concatenate %13, %14 in 1 : vector<8x128xf32>, vector<8x128xf32> -> vector<8x256xf32>
    %16 = arith.truncf %15 : vector<8x256xf32> to vector<8x256xbf16>
    %cst = arith.constant dense<0.000000e+00> : vector<8x32xf32>
    %17 = tpu.matmul %16, %1, %cst {dimension_numbers = #tpu.dot_dimension_numbers<[1], [0], [0], [1], [0, 0, 1, 1], [], []>} : vector<8x256xbf16>, vector<256x32xbf16>, vector<8x32xf32> -> vector<8x32xf32>
    %18 = arith.addf %17, %5 : vector<8x32xf32>
    %19 = arith.negf %18 : vector<8x32xf32>
    %20 = math.exp %19 : vector<8x32xf32>
    %cst_11 = arith.constant 1.000000e+00 : f32
    %21 = vector.broadcast %cst_11 : f32 to vector<8x32xf32>
    %22 = arith.addf %21, %20 : vector<8x32xf32>
    %23 = arith.divf %21, %22 : vector<8x32xf32>
    %24 = arith.mulf %18, %23 : vector<8x32xf32>
    %25 = arith.truncf %24 : vector<8x32xf32> to vector<8x32xbf16>
    %cst_12 = arith.constant dense<0.000000e+00> : vector<8x32xf32>
    %26 = tpu.matmul %25, %2, %cst_12 {dimension_numbers = #tpu.dot_dimension_numbers<[1], [0], [0], [1], [0, 0, 1, 1], [], []>} : vector<8x32xbf16>, vector<32x32xbf16>, vector<8x32xf32> -> vector<8x32xf32>
    %27 = arith.addf %26, %8 : vector<8x32xf32>
    %c0_13 = arith.constant 0 : index
    %c0_14 = arith.constant 0 : index
    %28 = vector.load %arg7[%c0_13, %c0_14] : memref<8x32xf32, #tpu.memory_space<vmem>>, vector<8x32xf32>
    tpu.vector_store %arg7[%c0_13, %c0_14], %27 {strides = array<i32>} : memref<8x32xf32, #tpu.memory_space<vmem>>, vector<8x32xf32>,
    return
  }
  func.func @transform_0(%arg0: i32) -> (i32, i32) {
    %c0_i32 = arith.constant 0 : i32
    %c0_i32_0 = arith.constant 0 : i32
    %c0_i32_1 = arith.constant 0 : i32
    return %c0_i32, %c0_i32_0 : i32, i32
  }
  func.func @transform_1(%arg0: i32) -> (i32, i32) {
    %c0_i32 = arith.constant 0 : i32
    %c0_i32_0 = arith.constant 0 : i32
    return %arg0, %c0_i32 : i32, i32
  }
  func.func @transform_2(%arg0: i32) -> (i32, i32) {
    %c0_i32 = arith.constant 0 : i32
    %c0_i32_0 = arith.constant 0 : i32
    %c0_i32_1 = arith.constant 0 : i32
    return %c0_i32, %c0_i32_0 : i32, i32
  }
  func.func @transform_3(%arg0: i32) -> (i32, i32) {
    %c0_i32 = arith.constant 0 : i32
    %c0_i32_0 = arith.constant 0 : i32
    %c0_i32_1 = arith.constant 0 : i32
    return %c0_i32, %c0_i32_0 : i32, i32
  }
  func.func @transform_4(%arg0: i32) -> (i32, i32) {
    %c0_i32 = arith.constant 0 : i32
    %c0_i32_0 = arith.constant 0 : i32
    %c0_i32_1 = arith.constant 0 : i32
    return %c0_i32, %c0_i32_0 : i32, i32
  }
  func.func @transform_5(%arg0: i32) -> (i32, i32) {
    %c0_i32 = arith.constant 0 : i32
    %c0_i32_0 = arith.constant 0 : i32
    %c0_i32_1 = arith.constant 0 : i32
    return %c0_i32, %c0_i32_0 : i32, i32
  }
  func.func @transform_6(%arg0: i32) -> (i32, i32) {
    %c0_i32 = arith.constant 0 : i32
    %c0_i32_0 = arith.constant 0 : i32
    return %arg0, %c0_i32 : i32, i32
  }
}

</mosaic_0001>

<bundles_post_ra>
// kernel: tpu_custom_call.1
= control target key start
LH: loop header
LB: loop body
LE: loop exit
PB: predicated region body
PF: predicated region fallthrough
CT: control target
= control target key end

     0   :  { %v642_v1 = vmov 0   ;;  %s786_s0 = inlined_call_operand.vmem [shape: f32[1,128], index: 0, kind: input, shape index: {}]   ;;  %s787_s1 = inlined_call_operand.vmem [shape: f32[8,1], index: 1, kind: input, shape index: {}]   ;;  %s788_s2 = inlined_call_operand.vmem [shape: bf16[256,32], index: 2, kind: input, shape index: {}]   ;;  %s789_s3 = inlined_call_operand.vmem [shape: f32[1,32], index: 3, kind: input, shape index: {}]   ;;  %s790_s4 = inlined_call_operand.vmem [shape: bf16[32,32], index: 4, kind: input, shape index: {}]   ;;  %s791_s5 = inlined_call_operand.vmem [shape: f32[1,32], index: 5, kind: input, shape index: {}]   ;;  %s792_s6 = inlined_call_operand.hbm [shape: f32[8,32], index: 6, kind: output, shape index: {}]  }
   0x1   :  { %v76_v0 = vld [vmem:[%s787_s1] sm:$0xff]  ;;  %591 = vset.pattern.permute.xlu0 %v642_v1 }
   0x2   :  { %79 = vperm.xlu0 %591, %v76_v0  }
   0x3   :  { %11 = vsyncpa [#allocation3], 0  ;;  %v592_v2 = vld [vmem:[%s788_s2 + $0x40] sm:$0xff]   ;;  %v594_v4 = vld [vmem:[%s788_s2 + $0x48] sm:$0xff]   ;;  %v643_v32 = vmov 2102212464  }
   0x4   :  { %v593_v3 = vld [vmem:[%s788_s2] sm:$0xff]   ;;  %544 = vmatprep.subr.bf16.mxu0 %v592_v2  ;;  %v595_v5 = vld [vmem:[%s788_s2 + $0x8] sm:$0xff]   ;;  %v596_v6 = vld [vmem:[%s788_s2 + $0x50] sm:$0xff]   ;;  %v644_v34 = vmov 920167782  }
   0x5   :  { %545 = vmatpush3.bf16.msra.mxu0 %v593_v3  ;;  %v597_v7 = vld [vmem:[%s788_s2 + $0x10] sm:$0xff]   ;;  %v598_v8 = vld [vmem:[%s788_s2 + $0x58] sm:$0xff]   ;;  %v600_v10 = vld [vmem:[%s788_s2 + $0x60] sm:$0xff]   ;;  %v645_v38 = vmov 1326507024  }
   0x6   :  { %546 = vmatprep.subr.bf16.mxu0 %v594_v4  ;;  %v599_v9 = vld [vmem:[%s788_s2 + $0x18] sm:$0xff]   ;;  %v601_v11 = vld [vmem:[%s788_s2 + $0x20] sm:$0xff]   ;;  %v602_v12 = vld [vmem:[%s788_s2 + $0x68] sm:$0xff]   ;;  %v646_v40 = vmov 683565275  }
   0x7   :  { %v603_v13 = vld [vmem:[%s788_s2 + $0x28] sm:$0xff]   ;;  %v604_v14 = vld [vmem:[%s788_s2 + $0x70] sm:$0xff]   ;;  %v606_v16 = vld [vmem:[%s788_s2 + $0x78] sm:$0xff]   ;;  %v647_v42 = vmov 2475754826  }
   0x8   :  { %v605_v15 = vld [vmem:[%s788_s2 + $0x30] sm:$0xff]   ;;  %v607_v17 = vld [vmem:[%s788_s2 + $0x38] sm:$0xff]   ;;  %v515_v18 = vld [vmem:[%s786_s0] ss:$0 sm:$0xff]  ;;  %v648_v45 = vmov 2131351028  }
   0x9   :  { %547 = vmatpush3.bf16.msra.mxu0 %v595_v5 }
   0xa   :  { %548 = vmatprep.subr.bf16.mxu0 %v596_v6 }
   0xd   :  { %549 = vmatpush3.bf16.msra.mxu0 %v597_v7 }
   0xe   :  { %550 = vmatprep.subr.bf16.mxu0 %v598_v8 }
  0x11   :  { %551 = vmatpush3.bf16.msra.mxu0 %v599_v9 }
  0x12   :  { %552 = vmatprep.subr.bf16.mxu0 %v600_v10 }
  0x15   :  { %553 = vmatpush3.bf16.msra.mxu0 %v601_v11 }
  0x16   :  { %554 = vmatprep.subr.bf16.mxu0 %v602_v12 }
  0x19   :  { %555 = vmatpush3.bf16.msra.mxu0 %v603_v13 }
  0x1a   :  { %556 = vmatprep.subr.bf16.mxu0 %v604_v14 }
  0x1d   :  { %557 = vmatpush3.bf16.msra.mxu0 %v605_v15 }
  0x1e   :  { %558 = vmatprep.subr.bf16.mxu0 %v606_v16 }
  0x21   :  { %559 = vmatpush3.bf16.msra.mxu0 %v607_v17 }
  0x81   :  { %v80_v19 = vpop.permute.xlu0 %79 }
  0x82   :  { %v741_v20 = vmul.f32 %v515_v18, %v80_v19 }
  0x84   :  { %v92_v21 = vand.u32 2139095040, %v741_v20  ;;  %v89_v22 = vand.u32 2147483647, %v741_v20  ;;  %vm91_vm7 = vcmp.lt.s32.totalorder %v741_v20, 0  ;;  %vm181_vm15 = vweird.f32 %v741_v20 }
  0x86   :  { %v93_v23 = vshrl.u32 %v92_v21, 23  ;;  %v96_v25 = vand.u32 8388607, %v89_v22  ;;  %vm90_vm8 = vcmp.le.f32.partialorder %v89_v22, 0.7853982 }
  0x88   :  { %v516_v24 = vadd.s32 4294967169, %v93_v23  ;;  %v97_v28 = vor.u32 8388608, %v96_v25 }
  0x8a   :  { %v99_v26 = vadd.s32 1, %v516_v24  ;;  %v137_v36 = vshll.u32 %v97_v28, 8 }
  0x8c   :  { %vm100_vm0 = vcmp.gt.s32.totalorder %v99_v26, 0 }
  0x8d   :  { %v101_v27 = vsel %vm100_vm0, %v99_v26, 0  ;;  %vm650_vm0 = vmmov 0  }
  0x8e   :  { %v103_v29 = vand.u32 31, %v101_v27  ;;  %v102_v30 = vshrl.u32 %v101_v27, 5 }
  0x90   :  { %v104_v31 = vsub.s32 32, %v103_v29  ;;  %v115_v33 = vshll.u32 %v643_v32, %v103_v29  ;;  %v118_v35 = vshll.u32 %v644_v34, %v103_v29  ;;  %v106_v41 = vshll.u32 %v646_v40, %v103_v29 }
  0x91   :  { %v109_v44 = vshll.u32 %v647_v42, %v103_v29  ;;  %v112_v47 = vshll.u32 %v648_v45, %v103_v29  ;;  %vm124_vm1 = vcmp.lt.s32.totalorder %v102_v30, 4  ;;  %vm121_vm2 = vcmp.lt.s32.totalorder %v102_v30, 1 }
  0x92   :  { %v116_v37 = vshrl.u32 %v644_v34, %v104_v31  ;;  %v119_v39 = vshrl.u32 %v645_v38, %v104_v31  ;;  %v107_v43 = vshrl.u32 %v647_v42, %v104_v31  ;;  %v110_v46 = vshrl.u32 %v648_v45, %v104_v31 }
  0x93   :  { %v113_v48 = vshrl.u32 %v643_v32, %v104_v31  ;;  %v105_v52 = vshrl.u32 %v646_v40, %v104_v31  ;;  %vm122_vm3 = vcmp.lt.s32.totalorder %v102_v30, 2  ;;  %vm123_vm4 = vcmp.lt.s32.totalorder %v102_v30, 3 }
  0x94   :  { %v117_v49 = vor.u32 %v116_v37, %v115_v33  ;;  %v120_v50 = vor.u32 %v119_v39, %v118_v35  ;;  %v108_v51 = vor.u32 %v107_v43, %v106_v41  ;;  %v111_v53 = vor.u32 %v110_v46, %v109_v44 }
  0x95   :  { %v114_v54 = vor.u32 %v113_v48, %v112_v47 }
  0x96   :  { %v130_v55 = vsel %vm124_vm1, %v117_v49, 920167782  ;;  %v134_v56 = vsel %vm124_vm1, %v120_v50, 1326507024  ;;  %v129_v58 = vsel %vm121_vm2, %v108_v51, %v111_v53  ;;  %v125_v61 = vsel %vm121_vm2, %v105_v52, %v108_v51 }
  0x97   :  { %v126_v57 = vsel %vm124_vm1, %v114_v54, 2102212464  ;;  %v131_v59 = vsel %vm123_vm4, %v114_v54, %v130_v55  ;;  %v133_v60 = vsel %vm121_vm2, %v111_v53, %v114_v54  ;;  %v135_v0 = vsel %vm123_vm4, %v117_v49, %v134_v56  ;;  %v608_v56 = vld [vmem:[%s790_s4] sm:$0xff]  }
  0x98   :  { %v127_v62 = vsel %vm123_vm4, %v111_v53, %v126_v57  ;;  %v132_v63 = vsel %vm122_vm3, %v129_v58, %v131_v59  ;;  %v136_v1 = vsel %vm122_vm3, %v133_v60, %v135_v0  ;;  %v649_v57 = vmov 0.0   ;;  %v513_v59 = vld [vmem:[%s789_s3] ss:$0 sm:$0xff]  ;;  %s651_s3 = smov [#allocation2]  }
  0x99   :  { %v747_v2 = vmul.u32.u64.low %v137_v36, %v132_v63  ;;  %v748_v3 = vmul.u32.u64.high %v137_v36, %v132_v63, %v747_v2  ;;  %v750_v4 = vmul.u32.u64.low %v137_v36, %v136_v1  ;;  %v751_v5 = vmul.u32.u64.high %v137_v36, %v136_v1, %v750_v4  ;;  %569 = vmatprep.subr.bf16.mxu1 %v649_v57  ;;  %573 = vmatprep.mubr.msk.bf16.mxu1 %vm650_vm0, %v649_v57  ;;  %s505_s12 = sshll.u32 %s651_s3, 4  ;;  %s506_s12 = int_to_ptr.vmem [resolvable:$true] %s505_s12 }
  0x9a   :  { %v128_v6 = vsel %vm122_vm3, %v125_v61, %v127_v62  ;;  %570 = vmatpush3.bf16.msra.mxu1 %v608_v56  ;;  %vm454_vm1 = vcmask 261120   ;;  %s618_s13 = scalar_lea.vmem %s506_s12, 128  ;;  %p623_p1 = scmp.lt.s32.totalorder %s506_s12, %s506_s12 }
  0x9b   :  { %v147_v7 = vadd.s32 1, %v748_v3  ;;  %v144_v8 = vmul.u32 %v137_v36, %v128_v6  ;;  %vm146_vm5 = vc.u32 %v751_v5, %v747_v2  ;;  %v145_v21 = vadd.s32 %v747_v2, %v751_v5  ;;  %571 = vmatprep.subr.bf16.mxu1 %v649_v57  ;;  %p619_p0 = scmp.ne.s32.totalorder %s506_s12, %s618_s13  ;;  %p624_p2 = scmp.lt.s32.totalorder %s618_s13, %s618_s13 }
  0x9d   :  { %v148_v9 = vsel %vm146_vm5, %v147_v7, %v748_v3  ;;  %v514_v7 = vld [vmem:[%s791_s5] ss:$0 sm:$0xff]  ;;  %p625_p3 = por %p624_p2, %p623_p1 }
  0x9e   :  { %v149_v10 = vadd.s32 %v148_v9, %v144_v8 }
  0x9f   :  { %p626_p4 = pnand %p625_p3, %p619_p0 }
  0xa0   :  { %v150_v11 = vadd.s32 536870912, %v149_v10 }
  0xa2   :  { %v151_v12 = vshrl.u32 %v150_v11, 30 }
  0xa4   :  { %v152_v13 = vshll.u32 %v151_v12, 30  ;;  %v175_v34 = vsub.s32 4, %v151_v12 }
  0xa6   :  { %v153_v14 = vsub.s32 %v149_v10, %v152_v13  ;;  %v176_v37 = vsel %vm91_vm7, %v175_v34, %v151_v12 }
  0xa7   :  { %v178_v39 = vsel %vm90_vm8, 0, %v176_v37 }
  0xa8   :  { %v155_v15 = vsub.s32 0, %v153_v14  ;;  %v285_v40 = vadd.s32 3, %v178_v39  ;;  %v182_v41 = vand.u32 3, %v178_v39 }
  0xaa   :  { %v517_v16 = vmin.u32 %v155_v15, %v153_v14  ;;  %v286_v42 = vand.u32 3, %v285_v40  ;;  %vm187_vm9 = vcmp.eq.s32.totalorder %v182_v41, 2  ;;  %vm184_vm11 = vcmp.eq.s32.totalorder %v182_v41, 0 }
  0xab   :  { %vm183_vm13 = vcmp.lt.s32.totalorder %v182_v41, 2 }
  0xac   :  { %v157_v17 = vclz %v517_v16  ;;  %vm291_vm10 = vcmp.eq.s32.totalorder %v286_v42, 2  ;;  %vm288_vm12 = vcmp.eq.s32.totalorder %v286_v42, 0  ;;  %vm287_vm14 = vcmp.lt.s32.totalorder %v286_v42, 2 }
  0xae   :  { %v518_v18 = vadd.s32 4294967294, %v157_v17 }
  0xb0   :  { %vm519_vm6 = vcmp.lt.s32.totalorder %v518_v18, 0 }
  0xb1   :  { %v160_v19 = vsel %vm519_vm6, 0, %v518_v18 }
  0xb2   :  { %v161_v23 = vsub.s32 32, %v160_v19  ;;  %v165_v24 = vsub.s32 4294967266, %v160_v19  ;;  %v162_v25 = vshll.u32 %v153_v14, %v160_v19 }
  0xb4   :  { %v163_v26 = vshrl.u32 %v145_v21, %v161_v23  ;;  %v166_v27 = vadd.s32 127, %v165_v24 }
  0xb6   :  { %v164_v28 = vor.u32 %v163_v26, %v162_v25  ;;  %v167_v29 = vshll.u32 %v166_v27, 23 }
  0xb8   :  { %v168_v30 = vor.u32 4788187, %v167_v29  ;;  %v171_v32 = vcvt.s32.f32 %v164_v28 }
  0xba   :  { %v169_v31 = vand.u32 2147483647, %v168_v30 }
  0xbc   :  { %v172_v33 = vmul.f32 %v171_v32, %v169_v31 }
  0xbe   :  { %v173_v35 = vxor.u32 2147483648, %v172_v33 }
  0xc0   :  { %v174_v36 = vsel %vm91_vm7, %v173_v35, %v172_v33 }
  0xc1   :  { %v177_v38 = vsel %vm90_vm8, %v741_v20, %v174_v36  ;;  %v609_v20 = vld [vmem:[%s790_s4 + $0x8] sm:$0xff]  }
  0xc2   :  { %610 = vcosq.f32 %v177_v38  ;;  %572 = vmatpush3.bf16.msra.mxu1 %v609_v20 }
  0xc3   :  { %612 = vsinq.f32 %v177_v38 }
  0xcc   :  { %v611_v43 = vpop.eup %610 }
  0xcd   :  { %v613_v44 = vpop.eup %612  ;;  %v188_v45 = vxor.u32 2147483648, %v611_v43 }
  0xce   :  { %v185_v46 = vxor.u32 2147483648, %v613_v44 }
  0xcf   :  { %v189_v47 = vsel %vm187_vm9, %v188_v45, %v613_v44  ;;  %v293_v22 = vsel %vm291_vm10, %v188_v45, %v613_v44 }
  0xd0   :  { %v186_v48 = vsel %vm184_vm11, %v611_v43, %v185_v46  ;;  %v290_v49 = vsel %vm288_vm12, %v611_v43, %v185_v46 }
  0xd1   :  { %v190_v50 = vsel %vm183_vm13, %v186_v48, %v189_v47  ;;  %v294_v51 = vsel %vm287_vm14, %v290_v49, %v293_v22 }
  0xd2   :  { %v191_v52 = vsel %vm181_vm15, nan, %v190_v50  ;;  %v295_v53 = vsel %vm181_vm15, nan, %v294_v51 }
  0xd3   :  { %v296_v54 = vpack.c.bf16 %v191_v52, %v191_v52  ;;  %v297_v55 = vpack.c.bf16 %v295_v53, %v295_v53 }
  0xd5   :  { %426 = vmatprep.mubr.bf16.mxu0 %v297_v55 }
  0xd6   :  { %427 = vmatmul.mubr.bf16.vlgmr.msra.gmra.mrb[0].mxu0 %v296_v54 }
 0x1a9   :  { %v560_v58 = vpop.f32.mrb[0].mxu0 }
 0x1aa   :  { %v561_v60 = vpop.f32.mrb[1].mxu0 }
 0x1ab   :  { %v562_v61 = vadd.f32 %v561_v60, %v560_v58  ;;  %v563_v62 = vpop.f32.mrb[2].mxu0 }
 0x1ac   :  { %v564_v63 = vpop.f32.mrb[3].mxu0 }
 0x1ad   :  { %v429_v0 = vadd.f32 %v562_v61, %v513_v59 }
 0x1af   :  { %v540_v1 = vmul.f32 -1.442695, %v429_v0 }
 0x1b1   :  { %614 = vpow2.f32 %v540_v1 }
 0x1bb   :  { %v615_v2 = vpop.eup %614 }
 0x1bc   :  { %v437_v3 = vadd.f32 1.0, %v615_v2 }
 0x1be   :  { %616 = vrcp.f32 %v437_v3 }
 0x1c8   :  { %v617_v4 = vpop.eup %616 }
 0x1c9   :  { %v440_v5 = vmul.f32 %v617_v4, %v429_v0 }
 0x1cb   :  { %v441_v6 = vpack.c.bf16 %v440_v5, %v440_v5 }
 0x1cd   :  { %574 = vmatmul.mubr.msk.bf16.vlgmr.msra.gmra.mrb[0].mxu1 %vm454_vm1, %v441_v6 }
 0x2a0   :  { %v492_v8 = vpop.f32.mrb[0].mxu1 }
 0x2a1   :  { %v493_v9 = vadd.f32 %v514_v7, %v492_v8  ;;  %v575_v10 = vpop.f32.mrb[1].mxu1 }
 0x2a2   :  { %v495_v11 = vpop.f32.mrb[2].mxu1 }
 0x2a3   :  { %498 = vst.msk [vmem:[#allocation2] sm:$0xff] %vm454_vm1, %v493_v9  ;;  %v576_v12 = vpop.f32.mrb[3].mxu1 }
 0x2a4   :  { %629 = shalt.err (!%p626_p4)
}
 0x2a5   :  { %s630_s5 = scalar_lea.hbm %s792_s6, 128 }
 0x2a6   :  { %p631_p5 = scmp.ne.s32.totalorder %s792_s6, %s630_s5  ;;  %p634_p6 = scmp.lt.u32.totalorder %s630_s5, %s792_s6 }
 0x2a8   :  { %p636_p7 = pnand %p634_p6, %p631_p5 }
 0x2aa   :  { %639 = shalt.err (!%p636_p7)
}
 0x2ab   :  { %508 = dma.vmem_to_hbm [thread:$0]  %s506_s12, 128, %s792_s6, [#allocation3]  }
 0x2ac   :  { %640 = dma.done.wait [#allocation3], 128  }
 0x2ad   :  { %641 = vsyncadd [#allocation3], 4294967168 }
 0x2ae   :  { %512 = vsyncpa [#allocation3], 1 }

</bundles_post_ra>
